<compile_context>
chip_gen: v5e
topology: v5e:2x2
jax: 0.10.0
libtpu: 0.0.40
codegen_flags: <defaults>
</compile_context>

<pallas_src>
import functools

import jax
import jax.numpy as jnp
from jax import lax
from jax.experimental import pallas as pl
from jax.experimental.pallas import tpu as pltpu


# ----------------------------------------------------------------------------
# Fused kernel: one (batch, head) pair per grid step
# ----------------------------------------------------------------------------
def _fused_attention_kernel(x_ref, wq_ref, wk_ref, wv_ref, qb_ref, vb_ref,
                            wp_ref, pb_ref, o_ref, acc_ref, *, num_heads):
    # x_ref  : (1, N, C)            activations (input dtype, cast to bf16 here)
    # wq/wk/wv_ref : (num_heads, C, d)  bf16, resident; scale pre-folded into wq
    # qb/vb_ref    : (num_heads, 1, d)  f32
    # wp_ref : (num_heads, d, C)    bf16, resident
    # pb_ref : (1, C)               f32
    # o_ref  : (1, N, C)
    # acc_ref: (N, C) f32 scratch accumulating the per-head projection partials
    h = pl.program_id(1)

    @pl.when(h == 0)
    def _init():
        acc_ref[...] = jnp.zeros_like(acc_ref)

    xb = x_ref[0].astype(jnp.bfloat16)                      # (N, C)

    # Per-head QKV projection (bf16 MXU, f32 accumulate). Scale already folded into wq/qb.
    q = jnp.dot(xb, wq_ref[h], preferred_element_type=jnp.float32) + qb_ref[h]   # (N, d)
    k = jnp.dot(xb, wk_ref[h], preferred_element_type=jnp.float32)               # (N, d)
    v = jnp.dot(xb, wv_ref[h], preferred_element_type=jnp.float32) + vb_ref[h]   # (N, d)

    # rope(q), rope(k): identity (see TODO at top); .type_as(v) is a no-op (same dtype).

    # q @ k^T without materializing a transposed copy of k.
    s = lax.dot_general(q.astype(jnp.bfloat16), k.astype(jnp.bfloat16),
                        (((1,), (1,)), ((), ())),
                        preferred_element_type=jnp.float32)                      # (N, N)
    m = jnp.max(s, axis=-1, keepdims=True)
    p = jnp.exp(s - m)
    denom = jnp.sum(p, axis=-1, keepdims=True)

    # Deferred softmax normalization: normalize the (N, d) PV result, not the (N, N) probs.
    o_h = jnp.dot(p.astype(jnp.bfloat16), v.astype(jnp.bfloat16),
                  preferred_element_type=jnp.float32)                            # (N, d)
    o_h = o_h * pl.reciprocal(denom, approx=True)                                # EUP slot

    # Output projection: per-head partial product, accumulated over the head grid axis.
    acc_ref[...] += jnp.dot(o_h.astype(jnp.bfloat16), wp_ref[h],
                            preferred_element_type=jnp.float32)                  # (N, C)

    @pl.when(h == num_heads - 1)
    def _finalize():
        o_ref[0] = (acc_ref[...] + pb_ref[...]).astype(o_ref.dtype)


# ----------------------------------------------------------------------------
# Parameter preparation (done ONCE at load time; not part of the hot path)
# ----------------------------------------------------------------------------
def prepare_attention_params(params, num_heads):
    """Re-layout raw (torch-equivalent) weights for the fused kernel.

    Raw layout (== torch tensors transposed once to (in, out)):
      qkv_w (C, 3*ahd), q_bias (ahd,), v_bias (ahd,), proj_w (ahd, C), proj_b (C,)
    """
    qkv_w = params["qkv_w"]
    q_bias = params["q_bias"]
    v_bias = params["v_bias"]
    proj_w = params["proj_w"]
    proj_b = params["proj_b"]

    C = qkv_w.shape[0]
    ahd = q_bias.shape[0]
    d = ahd // num_heads
    scale = d ** (-0.5)                        # SDPA default scale (qk_scale is None)

    def head_major(w):                         # (C, ahd) -> (num_heads, C, d)
        return jnp.transpose(w.reshape(C, num_heads, d), (1, 0, 2))

    return {
        # fold the softmax scale into the q projection (weight + bias)
        "wq": head_major(qkv_w[:, :ahd] * scale).astype(jnp.bfloat16),
        "wk": head_major(qkv_w[:, ahd:2 * ahd]).astype(jnp.bfloat16),
        "wv": head_major(qkv_w[:, 2 * ahd:]).astype(jnp.bfloat16),
        "qb": (q_bias * scale).reshape(num_heads, 1, d).astype(jnp.float32),
        "vb": v_bias.reshape(num_heads, 1, d).astype(jnp.float32),
        "wp": proj_w.reshape(num_heads, d, C).astype(jnp.bfloat16),
        "pb": proj_b.reshape(1, C).astype(jnp.float32),
    }


# ----------------------------------------------------------------------------
# Module forward
# ----------------------------------------------------------------------------
def attention_forward(x, prepared, num_heads):
    """EVA02 Attention forward (subln=False, qkv_bias=True, rope=identity).

    x: (B, H, W, C) channels-last; prepared: output of prepare_attention_params.
    """
    B, H, W, C = x.shape
    N = H * W
    nh, Cw, d = prepared["wq"].shape
    assert nh == num_heads and Cw == C
    ahd = nh * d

    x3 = x.reshape(B, N, C)                    # free reshape, no transpose

    kern = functools.partial(_fused_attention_kernel, num_heads=num_heads)
    const3 = lambda b, h: (0, 0, 0)
    const2 = lambda b, h: (0, 0)

    out = pl.pallas_call(
        kern,
        out_shape=jax.ShapeDtypeStruct((B, N, C), x.dtype),
        grid_spec=pltpu.PrefetchScalarGridSpec(
            num_scalar_prefetch=0,
            grid=(B, num_heads),
            in_specs=[
                pl.BlockSpec((1, N, C), lambda b, h: (b, 0, 0)),          # x block per batch
                pl.BlockSpec((num_heads, C, d), const3),                  # wq (resident)
                pl.BlockSpec((num_heads, C, d), const3),                  # wk (resident)
                pl.BlockSpec((num_heads, C, d), const3),                  # wv (resident)
                pl.BlockSpec((num_heads, 1, d), const3),                  # q bias (scaled)
                pl.BlockSpec((num_heads, 1, d), const3),                  # v bias
                pl.BlockSpec((num_heads, d, C), const3),                  # proj weight (resident)
                pl.BlockSpec((1, C), const2),                             # proj bias
            ],
            out_specs=pl.BlockSpec((1, N, C), lambda b, h: (b, 0, 0)),
            scratch_shapes=[pltpu.VMEM((N, C), jnp.float32)],
        ),
        compiler_params=pltpu.CompilerParams(
            dimension_semantics=("parallel", "arbitrary")),
        cost_estimate=pl.CostEstimate(
            flops=B * (2 * N * C * 3 * ahd + 4 * num_heads * N * N * d + 2 * N * ahd * C),
            transcendentals=B * num_heads * N * N,
            bytes_accessed=(4 * B * N * C            # x in (f32)
                            + 4 * B * N * C          # out (f32)
                            + 2 * (3 * ahd * C + ahd * C)   # bf16 weights, read once
                            + 4 * (2 * ahd + C))),   # f32 biases
    )(x3, prepared["wq"], prepared["wk"], prepared["wv"],
      prepared["qb"], prepared["vb"], prepared["wp"], prepared["pb"])

    return out.reshape(B, H, W, C)


# ----------------------------------------------------------------------------
# Pure-JAX f32 reference (PyTorch-equivalent math, raw weights)
# ----------------------------------------------------------------------------
def attention_reference(x, params, num_heads):
    B, H, W, C = x.shape
    N = H * W
    all_head_dim = params["q_bias"].shape[0]
    head_dim = all_head_dim // num_heads
    scale = head_dim ** (-0.5)

    x2 = x.reshape(B, N, C)
    qkv_bias = jnp.concatenate(
        [params["q_bias"], jnp.zeros_like(params["v_bias"]), params["v_bias"]], axis=0)
    qkv = x2 @ params["qkv_w"] + qkv_bias
    qkv = qkv.reshape(B, N, 3, num_heads, head_dim).transpose(2, 0, 3, 1, 4)
    q, k, v = qkv[0], qkv[1], qkv[2]
    s = jnp.einsum("bhnd,bhmd->bhnm", q, k) * scale
    p = jax.nn.softmax(s, axis=-1)
    o = jnp.einsum("bhnm,bhmd->bhnd", p, v)
    o = o.transpose(0, 2, 1, 3).reshape(B, N, all_head_dim)
    out = o @ params["proj_w"] + params["proj_b"]
    return out.reshape(B, H, W, C)


# ----------------------------------------------------------------------------
# Main
# ----------------------------------------------------------------------------
if __name__ == "__main__":
    B, H, W, C = 2, 8, 8, 128          # dim = C = 128, N = 64
    num_heads = 2                      # head_dim = 64, all_head_dim = 128
    all_head_dim = C

    key = jax.random.PRNGKey(0)
    kx, kw1, kb1, kb2, kw2, kb3 = jax.random.split(key, 6)

    x = jax.random.normal(kx, (B, H, W, C), dtype=jnp.float32)

    # Raw weights kept pre-transposed to (in, out) (== torch_weight.T done once at load time).
    raw_params = {
        "qkv_w": (jax.random.normal(kw1, (3 * all_head_dim, C), jnp.float32) * 0.05).T,
        "q_bias": jax.random.normal(kb1, (all_head_dim,), jnp.float32) * 0.05,
        "v_bias": jax.random.normal(kb2, (all_head_dim,), jnp.float32) * 0.05,
        "proj_w": (jax.random.normal(kw2, (C, all_head_dim), jnp.float32) * 0.05).T,
        "proj_b": jax.random.normal(kb3, (C,), jnp.float32) * 0.05,
    }

    # One-time parameter re-layout (head-major, bf16, scale folded).
    prepared = jax.tree_util.tree_map(jax.block_until_ready,
                                      prepare_attention_params(raw_params, num_heads))

    fwd = jax.jit(attention_forward, static_argnames=("num_heads",))
    out = jax.block_until_ready(fwd(x, prepared, num_heads=num_heads))

    ref = attention_reference(x, raw_params, num_heads)
    assert out.shape == (B, H, W, C)
    # tolerance accommodates bf16 MXU operands and the EUP approximate reciprocal
    assert jnp.allclose(out, ref, atol=2e-2, rtol=2e-2), "mismatch vs reference"

    print("KERNEL_OK")
</pallas_src>

<mosaic_0001>
module attributes {stable_mosaic.version = 11 : i64} {
  func.func @_fused_attention_kernel(%arg0: i32, %arg1: i32, %arg2: memref<1x64x128xf32, #tpu.memory_space<vmem>>, %arg3: memref<2x128x64xbf16, #tpu.memory_space<vmem>>, %arg4: memref<2x128x64xbf16, #tpu.memory_space<vmem>>, %arg5: memref<2x128x64xbf16, #tpu.memory_space<vmem>>, %arg6: memref<2x1x64xf32, #tpu.memory_space<vmem>>, %arg7: memref<2x1x64xf32, #tpu.memory_space<vmem>>, %arg8: memref<2x64x128xbf16, #tpu.memory_space<vmem>>, %arg9: memref<1x128xf32, #tpu.memory_space<vmem>>, %arg10: memref<1x64x128xf32, #tpu.memory_space<vmem>>, %arg11: memref<64x128xf32, #tpu.memory_space<vmem>>) attributes {dimension_semantics = [#tpu.dimension_semantics<parallel>, #tpu.dimension_semantics<arbitrary>], iteration_bounds = array<i64: 2, 2>, scalar_prefetch = 0 : i64, scratch_operands = 1 : i64, tpu.core_type = #tpu.core_type<tc>, window_params = [{transform_indices = @transform_0, window_bounds = array<i64: 1, 64, 128>}, {pipeline_mode = #tpu.pipeline_mode<synchronous>, transform_indices = @transform_1, window_bounds = array<i64: 2, 128, 64>}, {pipeline_mode = #tpu.pipeline_mode<synchronous>, transform_indices = @transform_2, window_bounds = array<i64: 2, 128, 64>}, {pipeline_mode = #tpu.pipeline_mode<synchronous>, transform_indices = @transform_3, window_bounds = array<i64: 2, 128, 64>}, {pipeline_mode = #tpu.pipeline_mode<synchronous>, transform_indices = @transform_4, window_bounds = array<i64: 2, 1, 64>}, {pipeline_mode = #tpu.pipeline_mode<synchronous>, transform_indices = @transform_5, window_bounds = array<i64: 2, 1, 64>}, {pipeline_mode = #tpu.pipeline_mode<synchronous>, transform_indices = @transform_6, window_bounds = array<i64: 2, 64, 128>}, {pipeline_mode = #tpu.pipeline_mode<synchronous>, transform_indices = @transform_7, window_bounds = array<i64: 1, 128>}, {transform_indices = @transform_8, window_bounds = array<i64: 1, 64, 128>}]} {
    %c0_i32 = arith.constant 0 : i32
    %0 = arith.cmpi eq, %arg1, %c0_i32 : i32
    %1 = arith.extui %0 : i1 to i32
    %c0_i32_0 = arith.constant 0 : i32
    %2 = arith.cmpi ne, %1, %c0_i32_0 : i32
    scf.if %2 {
      %cst_27 = arith.constant 0.000000e+00 : f32
      %55 = vector.broadcast %cst_27 : f32 to vector<64x128xf32>
      %c0_28 = arith.constant 0 : index
      %c0_29 = arith.constant 0 : index
      %56 = vector.load %arg11[%c0_28, %c0_29] : memref<64x128xf32, #tpu.memory_space<vmem>>, vector<64x128xf32>
      tpu.vector_store %arg11[%c0_28, %c0_29], %55 {strides = array<i32>} : memref<64x128xf32, #tpu.memory_space<vmem>>, vector<64x128xf32>,
    } else {
    }
    %c0 = arith.constant 0 : index
    %c0_1 = arith.constant 0 : index
    %c0_2 = arith.constant 0 : index
    %3 = vector.load %arg2[%c0, %c0_1, %c0_2] : memref<1x64x128xf32, #tpu.memory_space<vmem>>, vector<1x64x128xf32>
    %4 = vector.shape_cast %3 : vector<1x64x128xf32> to vector<64x128xf32>
    %5 = arith.truncf %4 : vector<64x128xf32> to vector<64x128xbf16>
    %6 = arith.index_cast %arg1 : i32 to index
    %c0_3 = arith.constant 0 : index
    %c0_4 = arith.constant 0 : index
    %7 = vector.load %arg3[%6, %c0_3, %c0_4] : memref<2x128x64xbf16, #tpu.memory_space<vmem>>, vector<1x128x64xbf16>
    %8 = vector.shape_cast %7 : vector<1x128x64xbf16> to vector<128x64xbf16>
    %cst = arith.constant dense<0.000000e+00> : vector<64x64xf32>
    %9 = tpu.matmul %5, %8, %cst {dimension_numbers = #tpu.dot_dimension_numbers<[1], [0], [0], [1], [0, 0, 1, 1], [], []>} : vector<64x128xbf16>, vector<128x64xbf16>, vector<64x64xf32> -> vector<64x64xf32>
    %10 = arith.index_cast %arg1 : i32 to index
    %c0_5 = arith.constant 0 : index
    %c0_6 = arith.constant 0 : index
    %11 = vector.load %arg6[%10, %c0_5, %c0_6] : memref<2x1x64xf32, #tpu.memory_space<vmem>>, vector<1x1x64xf32>
    %12 = vector.shape_cast %11 : vector<1x1x64xf32> to vector<1x64xf32>
    %13 = vector.broadcast %12 : vector<1x64xf32> to vector<64x64xf32>
    %14 = arith.addf %9, %13 : vector<64x64xf32>
    %15 = arith.index_cast %arg1 : i32 to index
    %c0_7 = arith.constant 0 : index
    %c0_8 = arith.constant 0 : index
    %16 = vector.load %arg4[%15, %c0_7, %c0_8] : memref<2x128x64xbf16, #tpu.memory_space<vmem>>, vector<1x128x64xbf16>
    %17 = vector.shape_cast %16 : vector<1x128x64xbf16> to vector<128x64xbf16>
    %cst_9 = arith.constant dense<0.000000e+00> : vector<64x64xf32>
    %18 = tpu.matmul %5, %17, %cst_9 {dimension_numbers = #tpu.dot_dimension_numbers<[1], [0], [0], [1], [0, 0, 1, 1], [], []>} : vector<64x128xbf16>, vector<128x64xbf16>, vector<64x64xf32> -> vector<64x64xf32>
    %19 = arith.index_cast %arg1 : i32 to index
    %c0_10 = arith.constant 0 : index
    %c0_11 = arith.constant 0 : index
    %20 = vector.load %arg5[%19, %c0_10, %c0_11] : memref<2x128x64xbf16, #tpu.memory_space<vmem>>, vector<1x128x64xbf16>
    %21 = vector.shape_cast %20 : vector<1x128x64xbf16> to vector<128x64xbf16>
    %cst_12 = arith.constant dense<0.000000e+00> : vector<64x64xf32>
    %22 = tpu.matmul %5, %21, %cst_12 {dimension_numbers = #tpu.dot_dimension_numbers<[1], [0], [0], [1], [0, 0, 1, 1], [], []>} : vector<64x128xbf16>, vector<128x64xbf16>, vector<64x64xf32> -> vector<64x64xf32>
    %23 = arith.index_cast %arg1 : i32 to index
    %c0_13 = arith.constant 0 : index
    %c0_14 = arith.constant 0 : index
    %24 = vector.load %arg7[%23, %c0_13, %c0_14] : memref<2x1x64xf32, #tpu.memory_space<vmem>>, vector<1x1x64xf32>
    %25 = vector.shape_cast %24 : vector<1x1x64xf32> to vector<1x64xf32>
    %26 = vector.broadcast %25 : vector<1x64xf32> to vector<64x64xf32>
    %27 = arith.addf %22, %26 : vector<64x64xf32>
    %28 = arith.truncf %14 : vector<64x64xf32> to vector<64x64xbf16>
    %29 = arith.truncf %18 : vector<64x64xf32> to vector<64x64xbf16>
    %cst_15 = arith.constant dense<0.000000e+00> : vector<64x64xf32>
    %30 = tpu.matmul %28, %29, %cst_15 {dimension_numbers = #tpu.dot_dimension_numbers<[1], [1], [0], [0], [0, 0, 1, 0], [], []>} : vector<64x64xbf16>, vector<64x64xbf16>, vector<64x64xf32> -> vector<64x64xf32>
    %cst_16 = arith.constant dense<0xFF800000> : vector<64xf32>
    %31 = vector.multi_reduction <maximumf>, %30, %cst_16 [1] : vector<64x64xf32> to vector<64xf32>
    %32 = vector.shape_cast %31 : vector<64xf32> to vector<64x1xf32>
    %33 = vector.broadcast %32 : vector<64x1xf32> to vector<64x64xf32>
    %34 = arith.subf %30, %33 : vector<64x64xf32>
    %35 = math.exp %34 : vector<64x64xf32>
    %cst_17 = arith.constant dense<0.000000e+00> : vector<64xf32>
    %36 = vector.multi_reduction <add>, %35, %cst_17 [1] : vector<64x64xf32> to vector<64xf32>
    %37 = vector.shape_cast %36 : vector<64xf32> to vector<64x1xf32>
    %38 = arith.truncf %35 : vector<64x64xf32> to vector<64x64xbf16>
    %39 = arith.truncf %27 : vector<64x64xf32> to vector<64x64xbf16>
    %cst_18 = arith.constant dense<0.000000e+00> : vector<64x64xf32>
    %40 = tpu.matmul %38, %39, %cst_18 {dimension_numbers = #tpu.dot_dimension_numbers<[1], [0], [0], [1], [0, 0, 1, 1], [], []>} : vector<64x64xbf16>, vector<64x64xbf16>, vector<64x64xf32> -> vector<64x64xf32>
    %41 = tpu.reciprocal %37 {approx = true} : vector<64x1xf32> -> vector<64x1xf32>
    %42 = vector.broadcast %41 : vector<64x1xf32> to vector<64x64xf32>
    %43 = arith.mulf %40, %42 : vector<64x64xf32>
    %c0_19 = arith.constant 0 : index
    %c0_20 = arith.constant 0 : index
    %44 = vector.load %arg11[%c0_19, %c0_20] : memref<64x128xf32, #tpu.memory_space<vmem>>, vector<64x128xf32>
    %45 = arith.truncf %43 : vector<64x64xf32> to vector<64x64xbf16>
    %46 = arith.index_cast %arg1 : i32 to index
    %c0_21 = arith.constant 0 : index
    %c0_22 = arith.constant 0 : index
    %47 = vector.load %arg8[%46, %c0_21, %c0_22] : memref<2x64x128xbf16, #tpu.memory_space<vmem>>, vector<1x64x128xbf16>
    %48 = vector.shape_cast %47 : vector<1x64x128xbf16> to vector<64x128xbf16>
    %cst_23 = arith.constant dense<0.000000e+00> : vector<64x128xf32>
    %49 = tpu.matmul %45, %48, %cst_23 {dimension_numbers = #tpu.dot_dimension_numbers<[1], [0], [0], [1], [0, 0, 1, 1], [], []>} : vector<64x64xbf16>, vector<64x128xbf16>, vector<64x128xf32> -> vector<64x128xf32>
    %50 = arith.addf %44, %49 : vector<64x128xf32>
    %c0_24 = arith.constant 0 : index
    %c0_25 = arith.constant 0 : index
    %51 = vector.load %arg11[%c0_24, %c0_25] : memref<64x128xf32, #tpu.memory_space<vmem>>, vector<64x128xf32>
    tpu.vector_store %arg11[%c0_24, %c0_25], %50 {strides = array<i32>} : memref<64x128xf32, #tpu.memory_space<vmem>>, vector<64x128xf32>,
    %c1_i32 = arith.constant 1 : i32
    %52 = arith.cmpi eq, %arg1, %c1_i32 : i32
    %53 = arith.extui %52 : i1 to i32
    %c0_i32_26 = arith.constant 0 : i32
    %54 = arith.cmpi ne, %53, %c0_i32_26 : i32
    scf.if %54 {
      %c0_27 = arith.constant 0 : index
      %c0_28 = arith.constant 0 : index
      %55 = vector.load %arg11[%c0_27, %c0_28] : memref<64x128xf32, #tpu.memory_space<vmem>>, vector<64x128xf32>
      %c0_29 = arith.constant 0 : index
      %c0_30 = arith.constant 0 : index
      %56 = vector.load %arg9[%c0_29, %c0_30] : memref<1x128xf32, #tpu.memory_space<vmem>>, vector<1x128xf32>
      %57 = vector.broadcast %56 : vector<1x128xf32> to vector<64x128xf32>
      %58 = arith.addf %55, %57 : vector<64x128xf32>
      %c0_31 = arith.constant 0 : index
      %c0_32 = arith.constant 0 : index
      %c0_33 = arith.constant 0 : index
      %59 = vector.load %arg10[%c0_31, %c0_32, %c0_33] : memref<1x64x128xf32, #tpu.memory_space<vmem>>, vector<1x64x128xf32>
      %60 = vector.shape_cast %59 : vector<1x64x128xf32> to vector<64x128xf32>
      %61 = vector.shape_cast %58 : vector<64x128xf32> to vector<1x64x128xf32>
      tpu.vector_store %arg10[%c0_31, %c0_32, %c0_33], %61 {strides = array<i32>} : memref<1x64x128xf32, #tpu.memory_space<vmem>>, vector<1x64x128xf32>,
    } else {
    }
    return
  }
  func.func @transform_0(%arg0: i32, %arg1: i32) -> (i32, i32, i32) {
    %c0_i32 = arith.constant 0 : i32
    %c0_i32_0 = arith.constant 0 : i32
    %c0_i32_1 = arith.constant 0 : i32
    return %arg0, %c0_i32, %c0_i32_0 : i32, i32, i32
  }
  func.func @transform_1(%arg0: i32, %arg1: i32) -> (i32, i32, i32) {
    %c0_i32 = arith.constant 0 : i32
    %c0_i32_0 = arith.constant 0 : i32
    %c0_i32_1 = arith.constant 0 : i32
    %c0_i32_2 = arith.constant 0 : i32
    return %c0_i32, %c0_i32_0, %c0_i32_1 : i32, i32, i32
  }
  func.func @transform_2(%arg0: i32, %arg1: i32) -> (i32, i32, i32) {
    %c0_i32 = arith.constant 0 : i32
    %c0_i32_0 = arith.constant 0 : i32
    %c0_i32_1 = arith.constant 0 : i32
    %c0_i32_2 = arith.constant 0 : i32
    return %c0_i32, %c0_i32_0, %c0_i32_1 : i32, i32, i32
  }
  func.func @transform_3(%arg0: i32, %arg1: i32) -> (i32, i32, i32) {
    %c0_i32 = arith.constant 0 : i32
    %c0_i32_0 = arith.constant 0 : i32
    %c0_i32_1 = arith.constant 0 : i32
    %c0_i32_2 = arith.constant 0 : i32
    return %c0_i32, %c0_i32_0, %c0_i32_1 : i32, i32, i32
  }
  func.func @transform_4(%arg0: i32, %arg1: i32) -> (i32, i32, i32) {
    %c0_i32 = arith.constant 0 : i32
    %c0_i32_0 = arith.constant 0 : i32
    %c0_i32_1 = arith.constant 0 : i32
    %c0_i32_2 = arith.constant 0 : i32
    return %c0_i32, %c0_i32_0, %c0_i32_1 : i32, i32, i32
  }
  func.func @transform_5(%arg0: i32, %arg1: i32) -> (i32, i32, i32) {
    %c0_i32 = arith.constant 0 : i32
    %c0_i32_0 = arith.constant 0 : i32
    %c0_i32_1 = arith.constant 0 : i32
    %c0_i32_2 = arith.constant 0 : i32
    return %c0_i32, %c0_i32_0, %c0_i32_1 : i32, i32, i32
  }
  func.func @transform_6(%arg0: i32, %arg1: i32) -> (i32, i32, i32) {
    %c0_i32 = arith.constant 0 : i32
    %c0_i32_0 = arith.constant 0 : i32
    %c0_i32_1 = arith.constant 0 : i32
    %c0_i32_2 = arith.constant 0 : i32
    return %c0_i32, %c0_i32_0, %c0_i32_1 : i32, i32, i32
  }
  func.func @transform_7(%arg0: i32, %arg1: i32) -> (i32, i32) {
    %c0_i32 = arith.constant 0 : i32
    %c0_i32_0 = arith.constant 0 : i32
    %c0_i32_1 = arith.constant 0 : i32
    return %c0_i32, %c0_i32_0 : i32, i32
  }
  func.func @transform_8(%arg0: i32, %arg1: i32) -> (i32, i32, i32) {
    %c0_i32 = arith.constant 0 : i32
    %c0_i32_0 = arith.constant 0 : i32
    %c0_i32_1 = arith.constant 0 : i32
    return %arg0, %c0_i32, %c0_i32_0 : i32, i32, i32
  }
}

</mosaic_0001>

<bundles_post_ra>
// kernel: attention_forward.1
= control target key start
LH: loop header
LB: loop body
LE: loop exit
PB: predicated region body
PF: predicated region fallthrough
CT: control target
= control target key end

     0   :  { %s1760_s0 = inlined_call_operand.vmem [shape: f32[2,64,128], index: 0, kind: input, shape index: {}]   ;;  %s1761_s1 = inlined_call_operand.vmem [shape: bf16[2,128,64], index: 1, kind: input, shape index: {}]   ;;  %s1762_s2 = inlined_call_operand.vmem [shape: bf16[2,128,64], index: 2, kind: input, shape index: {}]   ;;  %s1763_s3 = inlined_call_operand.vmem [shape: bf16[2,128,64], index: 3, kind: input, shape index: {}]   ;;  %s1764_s4 = inlined_call_operand.vmem [shape: f32[2,1,64], index: 4, kind: input, shape index: {}]   ;;  %s1765_s5 = inlined_call_operand.vmem [shape: f32[2,1,64], index: 5, kind: input, shape index: {}]   ;;  %s1766_s6 = inlined_call_operand.vmem [shape: bf16[2,64,128], index: 6, kind: input, shape index: {}]   ;;  %s1767_s7 = inlined_call_operand.vmem [shape: f32[1,128], index: 7, kind: input, shape index: {}]   ;;  %s1768_s8 = inlined_call_operand.hbm [shape: f32[2,64,128], index: 8, kind: output, shape index: {}]  }
   0x1   :  { %1771 = sst [smem:[#allocation7_spill]] %s1760_s0 }
   0x2   :  { %1772 = sst [smem:[#allocation8_spill]] %s1761_s1 }
   0x3   :  { %1773 = sst [smem:[#allocation9_spill]] %s1762_s2 }
   0x4   :  { %13 = vsyncpa [#allocation4], 0 }
   0x5   :  { %15 = vsyncpa [#allocation4 + $0x1], 0  ;;  %s1519_s27 = smov 0   ;;  %s1521_s28 = smov 0  }
   0x6   :  { %s1523_s29 = smov 0   ;;  %s1525_s30 = smov 0  }
   0x7   :  { %s1527_s9 = smov 0   ;;  %s1529_s10 = smov 0  }
   0x8   :  { %s1531_s11 = smov 0   ;;  %s1533_s12 = smov 0  }
   0x9 LB: > { %s1071_s13 = sadd.s32 4294967295, %s1469_s12   ;;  %s1072_s14 = sadd.s32 4294967294, %s1469_s12   ;;  %s1469_s12 = sphi %s1533_s12, %s21_s12   ;;  %s1465_s11 = sphi %s1531_s11, %s1788_s11   ;;  %s1461_s10 = sphi %s1529_s10, %s1787_s10   ;;  %s1457_s9 = sphi %s1527_s9, %s1786_s9   ;;  %s1453_s30 = sphi %s1525_s30, %s1785_s30   ;;  %s1449_s29 = sphi %s1523_s29, %s1784_s29   ;;  %s1445_s28 = sphi %s1521_s28, %s1783_s28   ;;  %s1441_s27 = sphi %s1519_s27, %s1782_s27  }
   0xa   : > { %s30_s15 = sadd.s32 1, %s1461_s10  ;;  %s33_s16 = sadd.s32 1, %s1465_s11 }
   0xb   : > { %p31_p0 = scmp.ge.s32.totalorder %s30_s15, 2  ;;  %p223_p1 = scmp.ne.s32.totalorder %s1449_s29, %s1445_s28 }
   0xc   : > { %p224_p2 = scmp.eq.s32.totalorder %s1071_s13, 3  ;;  %p229_p4 = scmp.ne.s32.totalorder %s1445_s28, %s1441_s27 }
   0xd   : > { %s1790_s15 = smov (%p31_p0, %s30_s15), 0  ;;  %s1792_s16 = smov (!%p31_p0, %s33_s16), %s1465_s11 }
   0xe   : > { %p1568_p3 = por %p224_p2, %p223_p1  ;;  %p35_p5 = scmp.ge.s32.totalorder %s1792_s16, 2 }
   0xf   : > { %p230_p6 = scmp.eq.s32.totalorder %s1072_s14, 3  ;;  %p1075_p7 = scmp.ge.s32.totalorder %s1469_s12, 1 }
  0x10   : > { %p277_p8 = scmp.lt.s32.totalorder %s1469_s12, 5  ;;  %s1794_s16 = smov (%p35_p5, %s1792_s16), 0 }
  0x11   : > { %1775 = sst [smem:[#allocation6_spill]] %s1794_s16  ;;  %p1578_p9 = por %p230_p6, %p229_p4 }
  0x12   : > { %p278_p10 = pnand %p1075_p7, %p277_p8  ;;  %s210_s19 = ssub.s32 %s1465_s11, %s1794_s16 }
  0x13   : > { %s213_s20 = sadd.s32 1, %s1449_s29  ;;  %p211_p11 = scmp.eq.s32.totalorder %s210_s19, 0 }
  0x14   : > { %281 = sbr.rel (%p278_p10) target bundleno = 889 (0x379), region = 52  ;;  %s1770_s22 = sand.u32 (!%p278_p10), 1, %s1445_s28  }
  0x15   : > { %s1586_s21 = scalar_select %p211_p11, %s1449_s29, %s213_s20  }
  0x16   : > { %p311_p12 = scmp.lt.s32.totalorder (!%p278_p10), %s1457_s9, 1  ;;  %s1076_s23 = sshll.u32 (!%p278_p10), %s1770_s22, 6 }
  0x17   : > { %s1777_s0 = sld [smem:[#allocation7_spill]] (!%p278_p10)  ;;  %s1598_s16 = scalar_lea.vmem (!%p278_p10), [#allocation3], %s1076_s23 }
  0x18   : > { %p1079_p13 = scmp.ne.s32.totalorder (!%p278_p10), %s1453_s30, 0 }
  0x19   : > { %s312_s24 = scalar_select %p311_p12, %s1457_s9, 1 }
  0x1a   : > { %320 = sbr.rel (%p1079_p13) target bundleno = 40 (0x28), region = 56 }
  0x1b   : > { %s1216_s25 = sshll.u32 %s312_s24, 6 }
  0x1d   : > { %s1596_s14 = scalar_lea.vmem %s1777_s0, %s1216_s25 }
  0x1f   : > { %v1471_v0 = vmov 0.0  }
  0x20   : > { %321 = vst [vmem:[#allocation2 + $0x30] sm:$0xff] %v1471_v0 }
  0x21   : > { %322 = vst [vmem:[#allocation2] sm:$0xff] %v1471_v0 }
  0x22   : > { %323 = vst [vmem:[#allocation2 + $0x18] sm:$0xff] %v1471_v0 }
  0x23   : > { %324 = vst [vmem:[#allocation2 + $0x10] sm:$0xff] %v1471_v0 }
  0x24   : > { %325 = vst [vmem:[#allocation2 + $0x8] sm:$0xff] %v1471_v0 }
  0x25   : > { %326 = vst [vmem:[#allocation2 + $0x20] sm:$0xff] %v1471_v0 }
  0x26   : > { %327 = vst [vmem:[#allocation2 + $0x28] sm:$0xff] %v1471_v0 }
  0x27   : > { %328 = vst [vmem:[#allocation2 + $0x38] sm:$0xff] %v1471_v0 }
  0x28 PF: > { %s1602_s19 = sshll.u32 %s1453_s30, 6  ;;  %s1778_s2 = sld [smem:[#allocation9_spill]]  ;;  %v333_v12 = vld [vmem:[%s1596_s14 + $0x20] sm:$0xff]  ;;  %v334_v13 = vld [vmem:[%s1596_s14 + $0x28] sm:$0xff]  ;;  %v335_v23 = vld [vmem:[%s1596_s14 + $0x30] sm:$0xff]  ;;  %vm645_vm0 = vcmask 523264  }
  0x29   : > { %s1779_s1 = sld [smem:[#allocation8_spill]]  ;;  %v329_v15 = vld [vmem:[%s1596_s14] sm:$0xff]  ;;  %v330_v16 = vld [vmem:[%s1596_s14 + $0x8] sm:$0xff]  ;;  %v1633_v18 = vpack.c.bf16 %v334_v13, %v333_v12  ;;  %v336_v24 = vld [vmem:[%s1596_s14 + $0x38] sm:$0xff]  ;;  %s555_s0 = scalar_lea.vmem %s1765_s5, %s1453_s30 }
  0x2a   : > { %v337_v19 = vpack.c.bf16 %v330_v16, %v329_v15  ;;  %v331_v25 = vld [vmem:[%s1596_s14 + $0x10] sm:$0xff]  ;;  %v332_v26 = vld [vmem:[%s1596_s14 + $0x18] sm:$0xff]  ;;  %v340_v27 = vpack.c.bf16 %v336_v24, %v335_v23  ;;  %s538_s14 = scalar_lea.vmem %s1763_s3, %s1602_s19  ;;  %p1210_p0 = scmp.ne.s32.totalorder %s1453_s30, 1 }
  0x2b   : > { %v338_v28 = vpack.c.bf16 %v332_v26, %v331_v25  ;;  %v1243_v29 = vld [vmem:[%s538_s14 + $0x38] sm:$0xff]  ;;  %v1242_v30 = vld [vmem:[%s538_s14 + $0x30] sm:$0xff]  ;;  %v1241_v31 = vld [vmem:[%s538_s14 + $0x28] sm:$0xff] }
  0x2c   : > { %v1240_v32 = vld [vmem:[%s538_s14 + $0x20] sm:$0xff]  ;;  %v1239_v33 = vld [vmem:[%s538_s14 + $0x18] sm:$0xff]  ;;  %v1238_v34 = vld [vmem:[%s538_s14 + $0x10] sm:$0xff] }
  0x2d   : > { %v1237_v35 = vld [vmem:[%s538_s14 + $0x8] sm:$0xff]  ;;  %v1236_v36 = vld [vmem:[%s538_s14] sm:$0xff] }
  0x2e   : > { %s1608_s24 = scalar_lea.vmem %s1778_s2, %s1602_s19 }
  0x2f   : > { %s1614_s13 = scalar_lea.vmem %s1779_s1, %s1602_s19  ;;  %v1234_v1 = vld [vmem:[%s1608_s24 + $0x38] sm:$0xff]  ;;  %v1233_v2 = vld [vmem:[%s1608_s24 + $0x30] sm:$0xff]  ;;  %v1232_v4 = vld [vmem:[%s1608_s24 + $0x28] sm:$0xff] }
  0x30   : > { %1258 = vmatpush.bf16.msra.mxu3 %v1234_v1  ;;  %508 = vmatpush.bf16.msra.mxu1 %v1234_v1  ;;  %v1225_v3 = vld [vmem:[%s1614_s13 + $0x38] sm:$0xff]  ;;  %v1231_v5 = vld [vmem:[%s1608_s24 + $0x20] sm:$0xff]  ;;  %v1224_v7 = vld [vmem:[%s1614_s13 + $0x30] sm:$0xff] }
  0x31   : > { %413 = vmatpush.bf16.msra.mxu0 %v1225_v3  ;;  %1250 = vmatpush.bf16.msra.mxu2 %v1225_v3  ;;  %v1230_v6 = vld [vmem:[%s1608_s24 + $0x18] sm:$0xff]  ;;  %v1229_v8 = vld [vmem:[%s1608_s24 + $0x10] sm:$0xff]  ;;  %v1223_v9 = vld [vmem:[%s1614_s13 + $0x28] sm:$0xff] }
  0x32   : > { %v1228_v10 = vld [vmem:[%s1608_s24 + $0x8] sm:$0xff]  ;;  %v1222_v11 = vld [vmem:[%s1614_s13 + $0x20] sm:$0xff]  ;;  %v1221_v17 = vld [vmem:[%s1614_s13 + $0x18] sm:$0xff] }
  0x33   : > { %v1227_v14 = vld [vmem:[%s1608_s24] sm:$0xff]  ;;  %v1220_v20 = vld [vmem:[%s1614_s13 + $0x10] sm:$0xff]  ;;  %v1219_v21 = vld [vmem:[%s1614_s13 + $0x8] sm:$0xff]  ;;  %s360_s24 = scalar_lea.vmem %s1764_s4, %s1453_s30 }
  0x34   : > { %1259 = vmatpush.bf16.msra.mxu3 %v1233_v2  ;;  %509 = vmatpush.bf16.msra.mxu1 %v1233_v2  ;;  %v1218_v22 = vld [vmem:[%s1614_s13] sm:$0xff] }
  0x35   : > { %414 = vmatpush.bf16.msra.mxu0 %v1224_v7  ;;  %1251 = vmatpush.bf16.msra.mxu2 %v1224_v7  ;;  %v1340_v54 = vld [vmem:[%s360_s24] ss:$0 sm:$0xff] }
  0x38   : > { %1260 = vmatpush.bf16.msra.mxu3 %v1232_v4  ;;  %510 = vmatpush.bf16.msra.mxu1 %v1232_v4 }
  0x39   : > { %415 = vmatpush.bf16.msra.mxu0 %v1223_v9  ;;  %1252 = vmatpush.bf16.msra.mxu2 %v1223_v9 }
  0x3c   : > { %1261 = vmatpush.bf16.msra.mxu3 %v1231_v5  ;;  %511 = vmatpush.bf16.msra.mxu1 %v1231_v5 }
  0x3d   : > { %416 = vmatpush.bf16.msra.mxu0 %v1222_v11  ;;  %1253 = vmatpush.bf16.msra.mxu2 %v1222_v11 }
  0x40   : > { %1262 = vmatpush.bf16.msra.mxu3 %v1230_v6  ;;  %512 = vmatpush.bf16.msra.mxu1 %v1230_v6 }
  0x41   : > { %417 = vmatpush.bf16.msra.mxu0 %v1221_v17  ;;  %1254 = vmatpush.bf16.msra.mxu2 %v1221_v17  ;;  %v1341_v17 = vld [vmem:[%s555_s0] ss:$0 sm:$0xff]  ;;  %s1244_s0 = sshll.u32 %s1453_s30, 5 }
  0x42   : > { %s850_s26 = scalar_lea.vmem %s1766_s6, %s1244_s0 }
  0x44   : > { %1263 = vmatpush.bf16.msra.mxu3 %v1229_v8  ;;  %513 = vmatpush.bf16.msra.mxu1 %v1229_v8 }
  0x45   : > { %418 = vmatpush.bf16.msra.mxu0 %v1220_v20  ;;  %1255 = vmatpush.bf16.msra.mxu2 %v1220_v20 }
  0x48   : > { %1264 = vmatpush.bf16.msra.mxu3 %v1228_v10  ;;  %514 = vmatpush.bf16.msra.mxu1 %v1228_v10 }
  0x49   : > { %419 = vmatpush.bf16.msra.mxu0 %v1219_v21  ;;  %1256 = vmatpush.bf16.msra.mxu2 %v1219_v21 }
  0x4c   : > { %1265 = vmatpush.bf16.msra.mxu3 %v1227_v14  ;;  %515 = vmatpush.bf16.msra.mxu1 %v1227_v14 }
  0x4d   : > { %420 = vmatpush.bf16.msra.mxu0 %v1218_v22  ;;  %1257 = vmatpush.bf16.msra.mxu2 %v1218_v22 }
  0x4f   : > { %526 = vmatmul.bf16.vlgmr.msra.gmra.mxu3 %v1633_v18  ;;  %516 = vmatmul.bf16.vlgmr.msra.gmra.mxu1 %v337_v19 }
  0x50   : > { %421 = vmatmul.bf16.vlgmr.msra.gmra.mxu0 %v337_v19  ;;  %431 = vmatmul.bf16.vlgmr.msra.gmra.mxu2 %v1633_v18 }
  0x51   : > { %608 = vmatpush.bf16.msrb.mxu2 %v1243_v29 }
  0x55   : > { %609 = vmatpush.bf16.msrb.mxu2 %v1242_v30 }
  0x59   : > { %610 = vmatpush.bf16.msrb.mxu2 %v1241_v31 }
  0x5d   : > { %611 = vmatpush.bf16.msrb.mxu2 %v1240_v32 }
  0x5f   : > { %531 = vmatmul.bf16.gmra.mxu3 %v340_v27  ;;  %521 = vmatmul.bf16.gmra.mxu1 %v338_v28 }
  0x60   : > { %426 = vmatmul.bf16.gmra.mxu0 %v338_v28  ;;  %436 = vmatmul.bf16.gmra.mxu2 %v340_v27 }
  0x61   : > { %612 = vmatpush.bf16.msrb.mxu2 %v1239_v33 }
  0x65   : > { %613 = vmatpush.bf16.msrb.mxu2 %v1238_v34 }
  0x69   : > { %614 = vmatpush.bf16.msrb.mxu2 %v1237_v35 }
  0x6d   : > { %615 = vmatpush.bf16.msrb.mxu2 %v1236_v36 }
  0x70   : > { %616 = vmatmul.bf16.vlgmr.msrb.gmra.mxu2 %v337_v19 }
  0x80   : > { %621 = vmatmul.bf16.gmra.mxu2 %v338_v28 }
  0x90   : > { %626 = vmatmul.bf16.gmra.mxu2 %v1633_v18 }
  0xa0   : > { %631 = vmatmul.bf16.gmra.mxu2 %v340_v27 }
  0xcc   : > { %v517_v38 = vpop.f32.mrf.mxu1 }
  0xcd   : > { %v422_v49 = vpop.f32.mrf.mxu0 }
  0xce   : > { %v423_v56 = vadd.f32 %v1340_v54, %v422_v49 }
  0xd2   : > { %v527_v37 = vpop.f32.mrf.mxu3 }
  0xd3   : > { %v432_v61 = vpop.f32.mrf.mxu2 }
  0xd4   : > { %v519_v40 = vpop.f32.mrf.mxu1  ;;  %v433_v2 = vadd.f32 %v1340_v54, %v432_v61 }
  0xd5   : > { %v424_v52 = vpop.f32.mrf.mxu0  ;;  %v641_v53 = vpack.c.bf16 %v519_v40, %v517_v38 }
  0xd6   : > { %v425_v57 = vadd.f32 %v1340_v54, %v424_v52 }
  0xd7   : > { %v659_v55 = vsel %vm645_vm0, %v641_v53, 0 }
  0xd8   : > { %v637_v59 = vpack.c.bf16 %v425_v57, %v423_v56 }
  0xda   : > { %v529_v39 = vpop.f32.mrf.mxu3 }
  0xdb   : > { %v643_v46 = vpack.c.bf16 %v529_v39, %v527_v37  ;;  %v434_v1 = vpop.f32.mrf.mxu2 }
  0xdc   : > { %v522_v44 = vpop.f32.mrf.mxu1  ;;  %v435_v3 = vadd.f32 %v1340_v54, %v434_v1 }
  0xdd   : > { %v665_v47 = vsel %vm645_vm0, %v643_v46, 0  ;;  %v427_v58 = vpop.f32.mrf.mxu0 }
  0xde   : > { %v428_v62 = vadd.f32 %v1340_v54, %v427_v58  ;;  %v639_v5 = vpack.c.bf16 %v435_v3, %v433_v2 }
  0xe2   : > { %v532_v41 = vpop.f32.mrf.mxu3 }
  0xe3   : > { %v437_v4 = vpop.f32.mrf.mxu2 }
  0xe4   : > { %v524_v48 = vpop.f32.mrf.mxu1  ;;  %v438_v7 = vadd.f32 %v1340_v54, %v437_v4 }
  0xe5   : > { %v642_v50 = vpack.c.bf16 %v524_v48, %v522_v44  ;;  %v429_v60 = vpop.f32.mrf.mxu0 }
  0xe6   : > { %v430_v63 = vadd.f32 %v1340_v54, %v429_v60 }
  0xe7   : > { %v662_v51 = vsel %vm645_vm0, %v642_v50, 0 }
  0xe8   : > { %v638_v0 = vpack.c.bf16 %v430_v63, %v428_v62 }
  0xea   : > { %v534_v42 = vpop.f32.mrf.mxu3 }
  0xeb   : > { %v644_v43 = vpack.c.bf16 %v534_v42, %v532_v41  ;;  %v439_v6 = vpop.f32.mrf.mxu2 }
  0xec   : > { %v440_v8 = vadd.f32 %v1340_v54, %v439_v6 }
  0xed   : > { %v668_v45 = vsel %vm645_vm0, %v644_v43, 0 }
  0xee   : > { %674 = vmatpush.bf16.xpose.msrb.mxu3 %v668_v45  ;;  %v640_v9 = vpack.c.bf16 %v440_v8, %v438_v7 }
  0xf3   : > { %v617_v10 = vpop.f32.mrf.mxu2 }
  0xf4   : > { %v618_v31 = vadd.f32 %v1341_v17, %v617_v10 }
  0xf6   : > { %675 = vmatpush.bf16.xpose.msrb.mxu3 %v665_v47 }
  0xfb   : > { %v619_v11 = vpop.f32.mrf.mxu2 }
  0xfc   : > { %v620_v32 = vadd.f32 %v1341_v17, %v619_v11 }
  0xfe   : > { %676 = vmatpush.bf16.xpose.msrb.mxu3 %v662_v51  ;;  %v775_v36 = vpack.c.bf16 %v620_v32, %v618_v31 }
 0x103   : > { %v622_v12 = vpop.f32.mrf.mxu2 }
 0x104   : > { %v623_v29 = vadd.f32 %v1341_v17, %v622_v12 }
 0x106   : > { %677 = vmatpush.bf16.xpose.msrb.mxu3 %v659_v55 }
 0x10b   : > { %v624_v13 = vpop.f32.mrf.mxu2 }
 0x10c   : > { %v625_v30 = vadd.f32 %v1341_v17, %v624_v13 }
 0x10d   : > { %1180 = vmatmul.msk.bf16.vlgmr.msrb.gmra.mxu3 %vm645_vm0, %v637_v59 }
 0x10e   : > { %v776_v34 = vpack.c.bf16 %v625_v30, %v623_v29  ;;  %v1246_v29 = vld [vmem:[%s850_s26 + $0x8] sm:$0xff]  ;;  %v1245_v30 = vld [vmem:[%s850_s26] sm:$0xff] }
 0x113   : > { %v627_v14 = vpop.f32.mrf.mxu2 }
 0x114   : > { %v628_v23 = vadd.f32 %v1341_v17, %v627_v14 }
 0x11b   : > { %v629_v15 = vpop.f32.mrf.mxu2 }
 0x11c   : > { %v630_v24 = vadd.f32 %v1341_v17, %v629_v15 }
 0x11d   : > { %1181 = vmatmul.msk.bf16.gmra.mxu3 %vm645_vm0, %v638_v0 }
 0x11e   : > { %v777_v28 = vpack.c.bf16 %v630_v24, %v628_v23 }
 0x123   : > { %v632_v16 = vpop.f32.mrf.mxu2 }
 0x124   : > { %v633_v21 = vadd.f32 %v1341_v17, %v632_v16 }
 0x12b   : > { %v634_v20 = vpop.f32.mrf.mxu2 }
 0x12c   : > { %v635_v22 = vadd.f32 %v1341_v17, %v634_v20 }
 0x12d   : > { %1182 = vmatmul.msk.bf16.gmra.mxu3 %vm645_vm0, %v639_v5 }
 0x12e   : > { %v778_v26 = vpack.c.bf16 %v635_v22, %v633_v21 }
 0x130   : > { %795 = vmatpush.bf16.msrb.mxu0 %v778_v26 }
 0x134   : > { %796 = vmatpush.bf16.msrb.mxu0 %v777_v28  ;;  %v1247_v28 = vld [vmem:[%s850_s26 + $0x10] sm:$0xff] }
 0x138   : > { %797 = vmatpush.bf16.msrb.mxu0 %v776_v34 }
 0x13c   : > { %798 = vmatpush.bf16.msrb.mxu0 %v775_v36 }
 0x13d   : > { %1183 = vmatmul.msk.bf16.gmra.mxu3 %vm645_vm0, %v640_v9 }
 0x190   : > { %v679_v18 = vpop.f32.mrf.mxu3 }
 0x191   : > { %v699_v19 = vsel %vm645_vm0, %v679_v18, -inf }
 0x192   : > { %700 = vmax.xlane.f32.xlu0 %v699_v19 }
 0x198   : > { %v681_v25 = vpop.f32.mrf.mxu3 }
 0x199   : > { %v702_v27 = vsel %vm645_vm0, %v681_v25, -inf }
 0x19a   : > { %703 = vmax.xlane.f32.xlu0 %v702_v27  ;;  %v1248_v27 = vld [vmem:[%s850_s26 + $0x18] sm:$0xff] }
 0x19b   : > { %899 = vmatpush.bf16.msrb.mxu1 %v1248_v27 }
 0x19f   : > { %900 = vmatpush.bf16.msrb.mxu1 %v1247_v28 }
 0x1a0   : > { %v684_v33 = vpop.f32.mrf.mxu3 }
 0x1a1   : > { %v705_v35 = vsel %vm645_vm0, %v684_v33, -inf }
 0x1a2   : > { %706 = vmax.xlane.f32.xlu1 %v705_v35 }
 0x1a3   : > { %901 = vmatpush.bf16.msrb.mxu1 %v1246_v29 }
 0x1a7   : > { %902 = vmatpush.bf16.msrb.mxu1 %v1245_v30 }
 0x1a8   : > { %v686_v37 = vpop.f32.mrf.mxu3 }
 0x1a9   : > { %v708_v38 = vsel %vm645_vm0, %v686_v37, -inf }
 0x1aa   : > { %709 = vmax.xlane.f32.xlu1 %v708_v38 }
 0x1b0   : > { %v689_v39 = vpop.f32.mrf.mxu3 }
 0x1b1   : > { %v711_v40 = vsel %vm645_vm0, %v689_v39, -inf }
 0x1b2   : > { %712 = vmax.xlane.f32.xlu2 %v711_v40 }
 0x1b8   : > { %v691_v41 = vpop.f32.mrf.mxu3 }
 0x1b9   : > { %v714_v42 = vsel %vm645_vm0, %v691_v41, -inf }
 0x1ba   : > { %715 = vmax.xlane.f32.xlu2 %v714_v42 }
 0x1c0   : > { %v694_v43 = vpop.f32.mrf.mxu3 }
 0x1c1   : > { %v717_v44 = vsel %vm645_vm0, %v694_v43, -inf }
 0x1c2   : > { %718 = vmax.xlane.f32.xlu0 %v717_v44 }
 0x1c8   : > { %v696_v45 = vpop.f32.mrf.mxu3 }
 0x1c9   : > { %v720_v46 = vsel %vm645_vm0, %v696_v45, -inf }
 0x1ca   : > { %721 = vmax.xlane.f32.xlu1 %v720_v46 }
 0x205   : > { %v701_v47 = vpop.xlane.xlu0 %700 }
 0x206   : > { %v723_v48 = vsub.f32 %v679_v18, %v701_v47 }
 0x208   : > { %v731_v49 = vmul.f32 1.442695, %v723_v48 }
 0x20a   : > { %1342 = vpow2.f32 %v731_v49 }
 0x20d   : > { %v704_v50 = vpop.xlane.xlu0 %703 }
 0x20e   : > { %v724_v51 = vsub.f32 %v681_v25, %v704_v50 }
 0x210   : > { %v1343_v52 = vpop.eup %1342  ;;  %v733_v53 = vmul.f32 1.442695, %v724_v51 }
 0x211   : > { %v747_v54 = vsel %vm645_vm0, %v1343_v52, 0.0 }
 0x212   : > { %1344 = vpow2.f32 %v733_v53  ;;  %748 = vadd.xlane.f32.xlu2 %v747_v54 }
 0x215   : > { %v707_v55 = vpop.xlane.xlu1 %706 }
 0x216   : > { %v725_v56 = vsub.f32 %v684_v33, %v707_v55 }
 0x218   : > { %v1345_v57 = vpop.eup %1344  ;;  %v735_v58 = vmul.f32 1.442695, %v725_v56 }
 0x219   : > { %v750_v59 = vsel %vm645_vm0, %v1345_v57, 0.0  ;;  %v771_v60 = vpack.c.bf16 %v1345_v57, %v1343_v52 }
 0x21a   : > { %1346 = vpow2.f32 %v735_v58  ;;  %751 = vadd.xlane.f32.xlu0 %v750_v59 }
 0x21b   : > { %1184 = vmatmul.msk.bf16.vlgmr.msrb.gmra.mxu0 %vm645_vm0, %v771_v60 }
 0x21d   : > { %v710_v61 = vpop.xlane.xlu1 %709 }
 0x21e   : > { %v726_v62 = vsub.f32 %v686_v37, %v710_v61 }
 0x220   : > { %v1347_v63 = vpop.eup %1346  ;;  %v737_v0 = vmul.f32 1.442695, %v726_v62 }
 0x221   : > { %v753_v1 = vsel %vm645_vm0, %v1347_v63, 0.0 }
 0x222   : > { %1348 = vpow2.f32 %v737_v0  ;;  %754 = vadd.xlane.f32.xlu1 %v753_v1 }
 0x225   : > { %v713_v2 = vpop.xlane.xlu2 %712 }
 0x226   : > { %v727_v3 = vsub.f32 %v689_v39, %v713_v2 }
 0x228   : > { %v1349_v4 = vpop.eup %1348  ;;  %v739_v5 = vmul.f32 1.442695, %v727_v3  ;;  %v836_v3 = vld [vmem:[#allocation2 + $0x30] sm:$0xff] }
 0x229   : > { %v756_v6 = vsel %vm645_vm0, %v1349_v4, 0.0  ;;  %v772_v7 = vpack.c.bf16 %v1349_v4, %v1347_v63 }
 0x22a   : > { %1350 = vpow2.f32 %v739_v5  ;;  %757 = vadd.xlane.f32.xlu2 %v756_v6  ;;  %v837_v6 = vld [vmem:[#allocation2] sm:$0xff] }
 0x22b   : > { %1185 = vmatmul.msk.bf16.gmra.mxu0 %vm645_vm0, %v772_v7 }
 0x22d   : > { %v716_v8 = vpop.xlane.xlu2 %715 }
 0x22e   : > { %v728_v9 = vsub.f32 %v691_v41, %v716_v8 }
 0x230   : > { %v1351_v10 = vpop.eup %1350  ;;  %v741_v11 = vmul.f32 1.442695, %v728_v9  ;;  %v838_v9 = vld [vmem:[#allocation2 + $0x18] sm:$0xff] }
 0x231   : > { %v759_v12 = vsel %vm645_vm0, %v1351_v10, 0.0 }
 0x232   : > { %1352 = vpow2.f32 %v741_v11  ;;  %760 = vadd.xlane.f32.xlu0 %v759_v12  ;;  %v839_v12 = vld [vmem:[#allocation2 + $0x10] sm:$0xff] }
 0x235   : > { %v719_v13 = vpop.xlane.xlu0 %718 }
 0x236   : > { %v729_v14 = vsub.f32 %v694_v43, %v719_v13 }
 0x238   : > { %v1353_v15 = vpop.eup %1352  ;;  %v743_v16 = vmul.f32 1.442695, %v729_v14 }
 0x239   : > { %v762_v17 = vsel %vm645_vm0, %v1353_v15, 0.0  ;;  %v773_v18 = vpack.c.bf16 %v1353_v15, %v1351_v10  ;;  %v840_v15 = vld [vmem:[#allocation2 + $0x8] sm:$0xff] }
 0x23a   : > { %1354 = vpow2.f32 %v743_v16  ;;  %763 = vadd.xlane.f32.xlu1 %v762_v17 }
 0x23b   : > { %1186 = vmatmul.msk.bf16.gmra.mxu0 %vm645_vm0, %v773_v18  ;;  %v841_v18 = vld [vmem:[#allocation2 + $0x20] sm:$0xff] }
 0x23d   : > { %v722_v19 = vpop.xlane.xlu1 %721 }
 0x23e   : > { %v730_v20 = vsub.f32 %v696_v45, %v722_v19 }
 0x240   : > { %v1355_v21 = vpop.eup %1354  ;;  %v745_v22 = vmul.f32 1.442695, %v730_v20 }
 0x241   : > { %v765_v23 = vsel %vm645_vm0, %v1355_v21, 0.0 }
 0x242   : > { %1356 = vpow2.f32 %v745_v22  ;;  %766 = vadd.xlane.f32.xlu2 %v765_v23 }
 0x248   : > { %v1357_v24 = vpop.eup %1356 }
 0x249   : > { %v768_v25 = vsel %vm645_vm0, %v1357_v24, 0.0  ;;  %v774_v26 = vpack.c.bf16 %v1357_v24, %v1355_v21  ;;  %v842_v21 = vld [vmem:[#allocation2 + $0x28] sm:$0xff]  ;;  %v843_v24 = vld [vmem:[#allocation2 + $0x38] sm:$0xff] }
 0x24a   : > { %769 = vadd.xlane.f32.xlu0 %v768_v25 }
 0x24b   : > { %1187 = vmatmul.msk.bf16.gmra.mxu0 %vm645_vm0, %v774_v26 }
 0x285   : > { %v749_v31 = vpop.xlane.xlu2 %748 }
 0x286   : > { %1358 = vrcp.f32 %v749_v31 }
 0x28c   : > { %v1359_v34 = vpop.eup %1358 }
 0x28d   : > { %v752_v32 = vpop.xlane.xlu0 %751 }
 0x28e   : > { %1360 = vrcp.f32 %v752_v32 }
 0x294   : > { %v1361_v35 = vpop.eup %1360 }
 0x295   : > { %v755_v40 = vpop.xlane.xlu1 %754 }
 0x296   : > { %1362 = vrcp.f32 %v755_v40 }
 0x298   : > { %v800_v33 = vpop.f32.mrf.mxu0 }
 0x299   : > { %v828_v37 = vmul.f32 %v1359_v34, %v800_v33 }
 0x29c   : > { %v1363_v43 = vpop.eup %1362 }
 0x29d   : > { %v758_v41 = vpop.xlane.xlu2 %757 }
 0x29e   : > { %1364 = vrcp.f32 %v758_v41 }
 0x2a0   : > { %v802_v36 = vpop.f32.mrf.mxu0 }
 0x2a1   : > { %v829_v38 = vmul.f32 %v1361_v35, %v802_v36 }
 0x2a3   : > { %v844_v39 = vpack.c.bf16 %v829_v38, %v828_v37 }
 0x2a4   : > { %v1365_v44 = vpop.eup %1364 }
 0x2a5   : > { %1206 = vmatmul.msk.bf16.vlgmr.msrb.gmra.mxu1 %vm645_vm0, %v844_v39  ;;  %v761_v49 = vpop.xlane.xlu0 %760 }
 0x2a6   : > { %1366 = vrcp.f32 %v761_v49 }
 0x2a8   : > { %v805_v42 = vpop.f32.mrf.mxu0 }
 0x2a9   : > { %v830_v46 = vmul.f32 %v1363_v43, %v805_v42 }
 0x2ac   : > { %v1367_v52 = vpop.eup %1366 }
 0x2ad   : > { %v764_v50 = vpop.xlane.xlu1 %763 }
 0x2ae   : > { %1368 = vrcp.f32 %v764_v50 }
 0x2b0   : > { %v807_v45 = vpop.f32.mrf.mxu0 }
 0x2b1   : > { %v831_v47 = vmul.f32 %v1365_v44, %v807_v45 }
 0x2b3   : > { %v845_v48 = vpack.c.bf16 %v831_v47, %v830_v46 }
 0x2b4   : > { %v1369_v53 = vpop.eup %1368 }
 0x2b5   : > { %1207 = vmatmul.msk.bf16.gmra.mxu1 %vm645_vm0, %v845_v48  ;;  %v767_v58 = vpop.xlane.xlu2 %766 }
 0x2b6   : > { %1370 = vrcp.f32 %v767_v58 }
 0x2b8   : > { %v810_v51 = vpop.f32.mrf.mxu0 }
 0x2b9   : > { %v832_v55 = vmul.f32 %v1367_v52, %v810_v51 }
 0x2bc   : > { %v1371_v61 = vpop.eup %1370 }
 0x2bd   : > { %v770_v59 = vpop.xlane.xlu0 %769 }
 0x2be   : > { %1372 = vrcp.f32 %v770_v59 }
 0x2c0   : > { %v812_v54 = vpop.f32.mrf.mxu0 }
 0x2c1   : > { %v833_v56 = vmul.f32 %v1369_v53, %v812_v54 }
 0x2c3   : > { %v846_v57 = vpack.c.bf16 %v833_v56, %v832_v55 }
 0x2c4   : > { %v1373_v62 = vpop.eup %1372 }
 0x2c5   : > { %1208 = vmatmul.msk.bf16.gmra.mxu1 %vm645_vm0, %v846_v57 }
 0x2c8   : > { %v815_v60 = vpop.f32.mrf.mxu0 }
 0x2c9   : > { %v834_v0 = vmul.f32 %v1371_v61, %v815_v60 }
 0x2d0   : > { %v817_v63 = vpop.f32.mrf.mxu0 }
 0x2d1   : > { %v835_v1 = vmul.f32 %v1373_v62, %v817_v63 }
 0x2d3   : > { %v847_v2 = vpack.c.bf16 %v835_v1, %v834_v0 }
 0x2d5   : > { %1209 = vmatmul.msk.bf16.gmra.mxu1 %vm645_vm0, %v847_v2 }
 0x322   : > { %v904_v4 = vpop.f32.mrf.mxu1 }
 0x323   : > { %v924_v5 = vadd.f32 %v904_v4, %v836_v3 }
 0x325   : > { %932 = vst [vmem:[#allocation2 + $0x30] sm:$0xff] %v924_v5 }
 0x32a   : > { %v906_v7 = vpop.f32.mrf.mxu1 }
 0x32b   : > { %v925_v8 = vadd.f32 %v906_v7, %v837_v6 }
 0x32d   : > { %933 = vst [vmem:[#allocation2] sm:$0xff] %v925_v8 }
 0x332   : > { %v909_v10 = vpop.f32.mrf.mxu1 }
 0x333   : > { %v926_v11 = vadd.f32 %v909_v10, %v838_v9 }
 0x335   : > { %934 = vst [vmem:[#allocation2 + $0x18] sm:$0xff] %v926_v11 }
 0x33a   : > { %v911_v13 = vpop.f32.mrf.mxu1 }
 0x33b   : > { %v927_v14 = vadd.f32 %v911_v13, %v839_v12 }
 0x33d   : > { %935 = vst [vmem:[#allocation2 + $0x10] sm:$0xff] %v927_v14 }
 0x342   : > { %v914_v16 = vpop.f32.mrf.mxu1 }
 0x343   : > { %v928_v17 = vadd.f32 %v914_v16, %v840_v15 }
 0x345   : > { %936 = vst [vmem:[#allocation2 + $0x8] sm:$0xff] %v928_v17 }
 0x34a   : > { %v916_v19 = vpop.f32.mrf.mxu1 }
 0x34b   : > { %v929_v20 = vadd.f32 %v916_v19, %v841_v18 }
 0x34d   : > { %937 = vst [vmem:[#allocation2 + $0x20] sm:$0xff] %v929_v20 }
 0x352   : > { %v919_v22 = vpop.f32.mrf.mxu1 }
 0x353   : > { %v930_v23 = vadd.f32 %v919_v22, %v842_v21 }
 0x355   : > { %938 = vst [vmem:[#allocation2 + $0x28] sm:$0xff] %v930_v23 }
 0x359   : > { %943 = sbr.rel (%p1210_p0) target bundleno = 873 (0x369), region = 60 }
 0x35a   : > { %v921_v25 = vpop.f32.mrf.mxu1 }
 0x35b   : > { %v931_v26 = vadd.f32 %v921_v25, %v843_v24 }
 0x35d   : > { %939 = vst [vmem:[#allocation2 + $0x38] sm:$0xff] %v931_v26 }
 0x35e   : > { %v944_v27 = vld [vmem:[#allocation2 + $0x30] sm:$0xff]  ;;  %v1374_v28 = vld [vmem:[%s1767_s7] ss:$0 sm:$0xff]  ;;  %v946_v30 = vld [vmem:[#allocation2 + $0x18] sm:$0xff] }
 0x35f   : > { %v945_v29 = vld [vmem:[#allocation2] sm:$0xff]  ;;  %v947_v31 = vld [vmem:[#allocation2 + $0x10] sm:$0xff]  ;;  %v956_v32 = vadd.f32 %v1374_v28, %v944_v27  ;;  %v958_v34 = vadd.f32 %v1374_v28, %v946_v30  ;;  %v948_v35 = vld [vmem:[#allocation2 + $0x8] sm:$0xff] }
 0x360   : > { %v957_v33 = vadd.f32 %v1374_v28, %v945_v29  ;;  %v949_v36 = vld [vmem:[#allocation2 + $0x20] sm:$0xff]  ;;  %v959_v37 = vadd.f32 %v1374_v28, %v947_v31  ;;  %v950_v38 = vld [vmem:[#allocation2 + $0x28] sm:$0xff]  ;;  %v960_v39 = vadd.f32 %v1374_v28, %v948_v35 }
 0x361   : > { %964 = vst [vmem:[%s1598_s16] sm:$0xff] %v956_v32  ;;  %v961_v41 = vadd.f32 %v1374_v28, %v949_v36  ;;  %v962_v42 = vadd.f32 %v1374_v28, %v950_v38 }
 0x362   : > { %965 = vst [vmem:[%s1598_s16 + $0x8] sm:$0xff] %v957_v33 }
 0x363   : > { %966 = vst [vmem:[%s1598_s16 + $0x10] sm:$0xff] %v958_v34 }
 0x364   : > { %v951_v40 = vld [vmem:[#allocation2 + $0x38] sm:$0xff]  ;;  %967 = vst [vmem:[%s1598_s16 + $0x18] sm:$0xff] %v959_v37 }
 0x365   : > { %v963_v43 = vadd.f32 %v1374_v28, %v951_v40  ;;  %968 = vst [vmem:[%s1598_s16 + $0x20] sm:$0xff] %v960_v39 }
 0x366   : > { %969 = vst [vmem:[%s1598_s16 + $0x28] sm:$0xff] %v961_v41 }
 0x367   : > { %970 = vst [vmem:[%s1598_s16 + $0x30] sm:$0xff] %v962_v42 }
 0x368   : > { %971 = vst [vmem:[%s1598_s16 + $0x38] sm:$0xff] %v963_v43 }
 0x369 PF: > { %s1249_s30 = sshll.u32 %s1457_s9, 6  ;;  %s985_s23 = sshll.u32 %s1598_s16, 4  ;;  %s986_s23 = int_to_ptr.vmem [resolvable:$true] %s985_s23 }
 0x36a   : > { %s984_s20 = scalar_lea.hbm %s1768_s8, %s1249_s30  ;;  %s1780_s24 = sand.u32 1, %s1445_s28  }
 0x36b   : > { %s987_s0 = sshll.u32 %s984_s20, 4  ;;  %s973_s25 = scalar_lea.sflag [#allocation4], %s1780_s24  ;;  %s988_s0 = int_to_ptr.hbm [resolvable:$true] %s987_s0 }
 0x36c   : > { %s1389_s26 = sshra.s32 %s988_s0, 4  ;;  %s1395_s9 = scalar_lea.hbm %s1768_s8, 128  ;;  %s1390_s26 = int_to_ptr.hbm [resolvable:$true] %s1389_s26 }
 0x36d   : > { %s1391_s14 = scalar_lea.hbm %s1390_s26, 64  ;;  %p1396_p5 = scmp.lt.s32.totalorder %s1390_s26, %s1768_s8 }
 0x36e   : > { %p1392_p1 = scmp.ne.s32.totalorder %s1390_s26, %s1391_s14  ;;  %p1397_p6 = scmp.lt.s32.totalorder %s1395_s9, %s1391_s14 }
 0x370   : > { %p1393_p2 = pnand %p1392_p1, %p1568_p3  ;;  %p1398_p7 = por %p1397_p6, %p1396_p5 }
 0x372   : > { %p1394_p4 = pneg %p1393_p2 }
 0x374   : > { %p1399_p8 = pnand %p1398_p7, %p1394_p4 }
 0x376   : > { %1402 = shalt.err (!%p1399_p8)
}
 0x377   : > { %s1472_s16 = smov 128   ;;  %s1473_s30 = smov 8  }
 0x378   : > { %1266 = dma.vmem_to_hbm [thread:$0]  (%p1568_p3), %s986_s23, 1024, %s988_s0, %s973_s25, %s1472_s16, %s1472_s16, %s1473_s30  }
 0x379 PF: > { %p1272_p10 = scmp.ge.s32.totalorder %s1469_s12, 2  ;;  %s1002_s1 = sand.u32 1, %s1441_s27  }
 0x37a   : > { %s1003_s2 = scalar_lea.sflag [#allocation4], %s1002_s1 }
 0x37b   : > { %p1269_p11 = pnand %p1272_p10, %p1578_p9 }
 0x37d   : > { %p1270_p12 = pneg %p1269_p11 }
 0x37f   : > { %1436 = dma.done.wait (%p1270_p12), %s1003_s2, 1024  }
 0x380   : > { %1438 = vsyncadd (%p1270_p12), %s1003_s2, 4294966272  ;;  %s21_s12 = sadd.s32 1, %s1469_s12   ;;  %s1781_s17 = sld [smem:[#allocation6_spill]] }
 0x381   : > { %p18_p13 = scmp.ge.s32.totalorder %s21_s12, 6   ;;  %s1782_s27 = smov %s1445_s28 }
 0x382   : > { %s1783_s28 = smov %s1449_s29  ;;  %s1784_s29 = smov %s1586_s21 }
 0x383   : > { %s1785_s30 = smov %s1461_s10  ;;  %s1786_s9 = smov %s1465_s11 }
 0x384   : > { %s1787_s10 = smov %s1790_s15  ;;  %20 = sbr.rel (!%p18_p13) target bundleno = 9 (0x9), region = 101 }
 0x386   : > { %s1788_s11 = smov %s1781_s17 }
 0x389   :  { %1009 = vsyncpa [#allocation4], 1 }
 0x38a   :  { %1011 = vsyncpa [#allocation4 + $0x1], 1 }

</bundles_post_ra>
